<compile_context>
chip_gen: v7x
topology: tpu7x:2x2x1
jax: 0.10.0
libtpu: 0.0.40
codegen_flags: <defaults>
</compile_context>

<pallas_src>
import functools

import jax
import jax.numpy as jnp
import numpy as np
from jax import lax
from jax.experimental import pallas as pl
from jax.experimental.pallas import tpu as pltpu

# Safe on every generation (v7x physical VMEM is 64 MiB / TC).
_VMEM_LIMIT = 48 * 1024 * 1024


def _pick_tile(dim, target, align):
    """Largest multiple of `align` that divides `dim` and is <= target.
    Falls back to the full dim (always a legal block size)."""
    if dim <= target:
        return dim
    t = (target // align) * align
    while t >= align:
        if dim % t == 0:
            return t
        t -= align
    return dim


# ----------------------------------------------------------------------------
# Kernel 1: tiled, pipelined matmul  y = x @ w.T   (w in torch (N, K) layout)
# ----------------------------------------------------------------------------
def _matmul_kernel(x_ref, w_ref, o_ref, acc_ref):
    @pl.when(pl.program_id(2) == 0)
    def _init():
        acc_ref[...] = jnp.zeros_like(acc_ref)

    # NT contraction: (tm, tk) x (tn, tk) -> (tm, tn); no explicit transpose.
    acc_ref[...] += lax.dot_general(
        x_ref[...], w_ref[...],
        dimension_numbers=(((1,), (1,)), ((), ())),
        preferred_element_type=jnp.float32)

    @pl.when(pl.program_id(2) == pl.num_programs(2) - 1)
    def _done():
        o_ref[...] = acc_ref[...].astype(o_ref.dtype)


def matmul_nt(x, w, *, tm_target=256, tn_target=512, tk_target=512):
    """x: (M, K), w: (N, K) -> (M, N) = x @ w.T."""
    M, K = x.shape
    N, K2 = w.shape
    assert K == K2
    tm = _pick_tile(M, tm_target, 8)
    tn = _pick_tile(N, tn_target, 128)
    tk = _pick_tile(K, tk_target, 128)
    grid = (M // tm, N // tn, K // tk)
    return pl.pallas_call(
        _matmul_kernel,
        out_shape=jax.ShapeDtypeStruct((M, N), x.dtype),
        grid=grid,
        in_specs=[pl.BlockSpec((tm, tk), lambda i, j, kk: (i, kk)),
                  pl.BlockSpec((tn, tk), lambda i, j, kk: (j, kk))],
        out_specs=pl.BlockSpec((tm, tn), lambda i, j, kk: (i, j)),
        scratch_shapes=[pltpu.VMEM((tm, tn), jnp.float32)],
        compiler_params=pltpu.CompilerParams(
            dimension_semantics=("parallel", "parallel", "arbitrary"),
            vmem_limit_bytes=_VMEM_LIMIT),
    )(x, w)


# ----------------------------------------------------------------------------
# Kernel 2: scaled dot-product attention, all heads of one batch per grid step
# ----------------------------------------------------------------------------
def _attend_head(qh, kh, vh, scale):
    # scale folded into q (len_q*d_k muls) instead of dividing the score matrix
    s = lax.dot_general(qh * scale, kh,
                        dimension_numbers=(((1,), (1,)), ((), ())),
                        preferred_element_type=jnp.float32)
    m = jnp.max(s, axis=-1, keepdims=True)
    p = jnp.exp(s - m)
    denom = jnp.sum(p, axis=-1, keepdims=True)
    o = jnp.dot(p, vh, preferred_element_type=jnp.float32)
    # deferred softmax normalization: only (len_q, d_v) muls + len_q reciprocals
    return o * pl.reciprocal(denom)


def _sdpa_kernel(q_ref, k_ref, v_ref, o_ref, *, n_head, d_k, d_v, scale):
    q = q_ref[0]            # (len_q, n_head*d_k)
    k = k_ref[0]            # (len_k, n_head*d_k)
    v = v_ref[0]            # (len_v, n_head*d_v)
    outs = []
    for h in range(n_head):                       # static unrolled loop
        outs.append(_attend_head(q[:, h * d_k:(h + 1) * d_k],
                                 k[:, h * d_k:(h + 1) * d_k],
                                 v[:, h * d_v:(h + 1) * d_v], scale))
    # single lane-dense store, already in torch head-merged layout
    o_ref[0] = jnp.concatenate(outs, axis=-1).astype(o_ref.dtype)


def _sdpa_qkv_kernel(qkv_ref, o_ref, *, n_head, d_k, d_v, scale):
    x = qkv_ref[0]          # (len, n_head*d_k | n_head*d_k | n_head*d_v)
    nq = n_head * d_k
    outs = []
    for h in range(n_head):
        qh = x[:, h * d_k:(h + 1) * d_k]
        kh = x[:, nq + h * d_k:nq + (h + 1) * d_k]
        vh = x[:, 2 * nq + h * d_v:2 * nq + (h + 1) * d_v]
        outs.append(_attend_head(qh, kh, vh, scale))
    o_ref[0] = jnp.concatenate(outs, axis=-1).astype(o_ref.dtype)


def sdpa(q_h, k_h, v_h, *, n_head, d_k, d_v, scale):
    """q_h: (B, len_q, H*d_k), k_h: (B, len_k, H*d_k), v_h: (B, len_v, H*d_v)."""
    B, len_q, _ = q_h.shape
    _, len_k, _ = k_h.shape
    _, len_v, _ = v_h.shape
    kern = functools.partial(_sdpa_kernel, n_head=n_head, d_k=d_k, d_v=d_v,
                             scale=scale)
    return pl.pallas_call(
        kern,
        out_shape=jax.ShapeDtypeStruct((B, len_q, n_head * d_v), q_h.dtype),
        grid=(B,),
        in_specs=[pl.BlockSpec((1, len_q, n_head * d_k), lambda b: (b, 0, 0)),
                  pl.BlockSpec((1, len_k, n_head * d_k), lambda b: (b, 0, 0)),
                  pl.BlockSpec((1, len_v, n_head * d_v), lambda b: (b, 0, 0))],
        out_specs=pl.BlockSpec((1, len_q, n_head * d_v), lambda b: (b, 0, 0)),
        compiler_params=pltpu.CompilerParams(
            dimension_semantics=("parallel",),
            vmem_limit_bytes=_VMEM_LIMIT),
    )(q_h, k_h, v_h)


def sdpa_fused_qkv(qkv, *, n_head, d_k, d_v, scale):
    """qkv: (B, L, 2*H*d_k + H*d_v) fused projection (self-attention path)."""
    B, L, F = qkv.shape
    kern = functools.partial(_sdpa_qkv_kernel, n_head=n_head, d_k=d_k, d_v=d_v,
                             scale=scale)
    return pl.pallas_call(
        kern,
        out_shape=jax.ShapeDtypeStruct((B, L, n_head * d_v), qkv.dtype),
        grid=(B,),
        in_specs=[pl.BlockSpec((1, L, F), lambda b: (b, 0, 0))],
        out_specs=pl.BlockSpec((1, L, n_head * d_v), lambda b: (b, 0, 0)),
        compiler_params=pltpu.CompilerParams(
            dimension_semantics=("parallel",),
            vmem_limit_bytes=_VMEM_LIMIT),
    )(qkv)


# ----------------------------------------------------------------------------
# Kernel 3: fused output projection (fc) + residual add + LayerNorm, row-tiled
# ----------------------------------------------------------------------------
def _fc_ln_kernel(x_ref, res_ref, w_ref, b_ref, g_ref, beta_ref, o_ref, *, eps):
    y = lax.dot_general(x_ref[...], w_ref[...],
                        dimension_numbers=(((1,), (1,)), ((), ())),
                        preferred_element_type=jnp.float32)
    y = y + b_ref[...] + res_ref[...]
    mean = jnp.mean(y, axis=-1, keepdims=True)
    var = jnp.mean((y - mean) ** 2, axis=-1, keepdims=True)
    yn = (y - mean) * lax.rsqrt(var + eps)
    o_ref[...] = (yn * g_ref[...] + beta_ref[...]).astype(o_ref.dtype)


def fc_residual_layernorm(x, residual, w, b, gamma, beta, eps=1e-5,
                          tm_target=256):
    """x: (M, H*d_v), residual: (M, d_model), w: (d_model, H*d_v) torch layout."""
    M, K = x.shape
    N = w.shape[0]
    tm = _pick_tile(M, tm_target, 8)
    kern = functools.partial(_fc_ln_kernel, eps=eps)
    return pl.pallas_call(
        kern,
        out_shape=jax.ShapeDtypeStruct((M, N), x.dtype),
        grid=(M // tm,),
        in_specs=[pl.BlockSpec((tm, K), lambda i: (i, 0)),
                  pl.BlockSpec((tm, N), lambda i: (i, 0)),
                  pl.BlockSpec((N, K), lambda i: (0, 0)),
                  pl.BlockSpec((1, N), lambda i: (0, 0)),
                  pl.BlockSpec((1, N), lambda i: (0, 0)),
                  pl.BlockSpec((1, N), lambda i: (0, 0))],
        out_specs=pl.BlockSpec((tm, N), lambda i: (i, 0)),
        compiler_params=pltpu.CompilerParams(
            dimension_semantics=("parallel",),
            vmem_limit_bytes=_VMEM_LIMIT),
    )(x, residual, w, b, gamma, beta)


# ----------------------------------------------------------------------------
# MultiHeadAttention forward (wrapper glue in plain JAX)
# ----------------------------------------------------------------------------
def multi_head_attention(params, q, k, v, n_head, d_k, d_v):
    sz_b, len_q, d_model = q.shape
    _, len_k, _ = k.shape
    _, len_v, _ = v.shape
    residual2d = q.reshape(sz_b * len_q, d_model)
    scale = 1.0 / float(np.sqrt(d_k))

    if q is k and k is v:
        # Self-attention fast path: one fused projection, x streamed once.
        w_all = jnp.concatenate(
            [params["w_qs"], params["w_ks"], params["w_vs"]], axis=0)
        qkv2d = matmul_nt(q.reshape(sz_b * len_q, d_model), w_all)
        qkv = qkv2d.reshape(sz_b, len_q, -1)
        attn_out = sdpa_fused_qkv(qkv, n_head=n_head, d_k=d_k, d_v=d_v,
                                  scale=scale)
    else:
        q_p = matmul_nt(q.reshape(sz_b * len_q, d_model), params["w_qs"])
        k_p = matmul_nt(k.reshape(sz_b * len_k, d_model), params["w_ks"])
        v_p = matmul_nt(v.reshape(sz_b * len_v, d_model), params["w_vs"])
        attn_out = sdpa(q_p.reshape(sz_b, len_q, -1),
                        k_p.reshape(sz_b, len_k, -1),
                        v_p.reshape(sz_b, len_v, -1),
                        n_head=n_head, d_k=d_k, d_v=d_v, scale=scale)

    # attn_out is already (B, L, n_head*d_v) in torch's head-merged layout.
    out2d = fc_residual_layernorm(
        attn_out.reshape(sz_b * len_q, n_head * d_v),
        residual2d,
        params["fc_w"],                       # (d_model, n_head*d_v), NT inside
        params["fc_b"].reshape(1, d_model),
        params["ln_g"].reshape(1, d_model),
        params["ln_b"].reshape(1, d_model),
    )
    return out2d.reshape(sz_b, len_q, d_model)


# ----------------------------------------------------------------------------
# Pure-JAX reference for sanity checking
# ----------------------------------------------------------------------------
def reference(params, q, k, v, n_head, d_k, d_v):
    sz_b, len_q, d_model = q.shape
    residual = q
    qp = (q @ params["w_qs"].T).reshape(sz_b, len_q, n_head, d_k)
    kp = (k @ params["w_ks"].T).reshape(sz_b, k.shape[1], n_head, d_k)
    vp = (v @ params["w_vs"].T).reshape(sz_b, v.shape[1], n_head, d_v)
    qp = jnp.transpose(qp, (2, 0, 1, 3)).reshape(-1, len_q, d_k)
    kp = jnp.transpose(kp, (2, 0, 1, 3)).reshape(-1, k.shape[1], d_k)
    vp = jnp.transpose(vp, (2, 0, 1, 3)).reshape(-1, v.shape[1], d_v)
    s = jnp.einsum("bqd,bkd->bqk", qp, kp) / np.power(d_k, 0.5)
    a = jax.nn.softmax(s, axis=2)
    o = jnp.einsum("bqk,bkd->bqd", a, vp)
    o = o.reshape(n_head, sz_b, len_q, d_v)
    o = jnp.transpose(o, (1, 2, 0, 3)).reshape(sz_b, len_q, -1)
    o = o @ params["fc_w"].T + params["fc_b"]
    o = o + residual
    mean = jnp.mean(o, axis=-1, keepdims=True)
    var = jnp.mean((o - mean) ** 2, axis=-1, keepdims=True)
    return (o - mean) / jnp.sqrt(var + 1e-5) * params["ln_g"] + params["ln_b"]


if __name__ == "__main__":
    # Small shapes consistent with the module
    n_head, d_model, d_k, d_v = 4, 32, 8, 8
    sz_b, seq = 2, 8

    key = jax.random.PRNGKey(0)
    ks = jax.random.split(key, 8)

    std_qk = np.sqrt(2.0 / (d_model + d_k))
    std_v = np.sqrt(2.0 / (d_model + d_v))
    xavier_std = np.sqrt(2.0 / (n_head * d_v + d_model))

    params = {
        "w_qs": jax.random.normal(ks[0], (n_head * d_k, d_model),
                                  jnp.float32) * std_qk,
        "w_ks": jax.random.normal(ks[1], (n_head * d_k, d_model),
                                  jnp.float32) * std_qk,
        "w_vs": jax.random.normal(ks[2], (n_head * d_v, d_model),
                                  jnp.float32) * std_v,
        "fc_w": jax.random.normal(ks[3], (d_model, n_head * d_v),
                                  jnp.float32) * xavier_std,
        "fc_b": jax.random.normal(ks[4], (d_model,), jnp.float32) * 0.01,
        "ln_g": jnp.ones((d_model,), jnp.float32),
        "ln_b": jnp.zeros((d_model,), jnp.float32),
    }

    q = jax.random.normal(ks[5], (sz_b, seq, d_model), jnp.float32)
    k = jax.random.normal(ks[6], (sz_b, seq, d_model), jnp.float32)
    v = jax.random.normal(ks[7], (sz_b, seq, d_model), jnp.float32)

    # General (cross-attention) path: distinct q, k, v.
    out = multi_head_attention(params, q, k, v, n_head, d_k, d_v)
    out = jax.block_until_ready(out)
    ref = reference(params, q, k, v, n_head, d_k, d_v)
    np.testing.assert_allclose(np.asarray(out), np.asarray(ref),
                               rtol=2e-4, atol=2e-4)

    # Self-attention path: fused qkv projection + fused-qkv SDPA kernel.
    out_self = multi_head_attention(params, q, q, q, n_head, d_k, d_v)
    out_self = jax.block_until_ready(out_self)
    ref_self = reference(params, q, q, q, n_head, d_k, d_v)
    np.testing.assert_allclose(np.asarray(out_self), np.asarray(ref_self),
                               rtol=2e-4, atol=2e-4)

    print("KERNEL_OK")
</pallas_src>

<mosaic_0001>
module attributes {stable_mosaic.version = 11 : i64} {
  func.func @_matmul_kernel(%arg0: i32, %arg1: i32, %arg2: i32, %arg3: memref<16x32xf32, #tpu.memory_space<vmem>>, %arg4: memref<32x32xf32, #tpu.memory_space<vmem>>, %arg5: memref<16x32xf32, #tpu.memory_space<vmem>>, %arg6: memref<16x32xf32, #tpu.memory_space<vmem>>) attributes {dimension_semantics = [#tpu.dimension_semantics<parallel>, #tpu.dimension_semantics<parallel>, #tpu.dimension_semantics<arbitrary>], iteration_bounds = array<i64: 1, 1, 1>, scalar_prefetch = 0 : i64, scratch_operands = 1 : i64, tpu.core_type = #tpu.core_type<tc>, window_params = [{transform_indices = @transform_0, window_bounds = array<i64: 16, 32>}, {transform_indices = @transform_1, window_bounds = array<i64: 32, 32>}, {transform_indices = @transform_2, window_bounds = array<i64: 16, 32>}]} {
    %c0_i32 = arith.constant 0 : i32
    %0 = arith.cmpi eq, %arg2, %c0_i32 : i32
    %1 = arith.extui %0 : i1 to i32
    %c0_i32_0 = arith.constant 0 : i32
    %2 = arith.cmpi ne, %1, %c0_i32_0 : i32
    scf.if %2 {
      %cst_10 = arith.constant 0.000000e+00 : f32
      %12 = vector.broadcast %cst_10 : f32 to vector<16x32xf32>
      %c0_11 = arith.constant 0 : index
      %c0_12 = arith.constant 0 : index
      %13 = vector.load %arg6[%c0_11, %c0_12] : memref<16x32xf32, #tpu.memory_space<vmem>>, vector<16x32xf32>
      tpu.vector_store %arg6[%c0_11, %c0_12], %12 {strides = array<i32>} : memref<16x32xf32, #tpu.memory_space<vmem>>, vector<16x32xf32>,
    } else {
    }
    %c0 = arith.constant 0 : index
    %c0_1 = arith.constant 0 : index
    %3 = vector.load %arg6[%c0, %c0_1] : memref<16x32xf32, #tpu.memory_space<vmem>>, vector<16x32xf32>
    %c0_2 = arith.constant 0 : index
    %c0_3 = arith.constant 0 : index
    %4 = vector.load %arg3[%c0_2, %c0_3] : memref<16x32xf32, #tpu.memory_space<vmem>>, vector<16x32xf32>
    %c0_4 = arith.constant 0 : index
    %c0_5 = arith.constant 0 : index
    %5 = vector.load %arg4[%c0_4, %c0_5] : memref<32x32xf32, #tpu.memory_space<vmem>>, vector<32x32xf32>
    %cst = arith.constant dense<0.000000e+00> : vector<16x32xf32>
    %6 = tpu.matmul %4, %5, %cst {dimension_numbers = #tpu.dot_dimension_numbers<[1], [1], [0], [0], [0, 0, 1, 0], [], []>} : vector<16x32xf32>, vector<32x32xf32>, vector<16x32xf32> -> vector<16x32xf32>
    %7 = arith.addf %3, %6 : vector<16x32xf32>
    %c0_6 = arith.constant 0 : index
    %c0_7 = arith.constant 0 : index
    %8 = vector.load %arg6[%c0_6, %c0_7] : memref<16x32xf32, #tpu.memory_space<vmem>>, vector<16x32xf32>
    tpu.vector_store %arg6[%c0_6, %c0_7], %7 {strides = array<i32>} : memref<16x32xf32, #tpu.memory_space<vmem>>, vector<16x32xf32>,
    %c0_i32_8 = arith.constant 0 : i32
    %9 = arith.cmpi eq, %arg2, %c0_i32_8 : i32
    %10 = arith.extui %9 : i1 to i32
    %c0_i32_9 = arith.constant 0 : i32
    %11 = arith.cmpi ne, %10, %c0_i32_9 : i32
    scf.if %11 {
      %c0_10 = arith.constant 0 : index
      %c0_11 = arith.constant 0 : index
      %12 = vector.load %arg6[%c0_10, %c0_11] : memref<16x32xf32, #tpu.memory_space<vmem>>, vector<16x32xf32>
      %c0_12 = arith.constant 0 : index
      %c0_13 = arith.constant 0 : index
      %13 = vector.load %arg5[%c0_12, %c0_13] : memref<16x32xf32, #tpu.memory_space<vmem>>, vector<16x32xf32>
      tpu.vector_store %arg5[%c0_12, %c0_13], %12 {strides = array<i32>} : memref<16x32xf32, #tpu.memory_space<vmem>>, vector<16x32xf32>,
    } else {
    }
    return
  }
  func.func @transform_0(%arg0: i32, %arg1: i32, %arg2: i32) -> (i32, i32) {
    %c0_i32 = arith.constant 0 : i32
    return %arg0, %arg2 : i32, i32
  }
  func.func @transform_1(%arg0: i32, %arg1: i32, %arg2: i32) -> (i32, i32) {
    %c0_i32 = arith.constant 0 : i32
    return %arg1, %arg2 : i32, i32
  }
  func.func @transform_2(%arg0: i32, %arg1: i32, %arg2: i32) -> (i32, i32) {
    %c0_i32 = arith.constant 0 : i32
    return %arg0, %arg1 : i32, i32
  }
}

</mosaic_0001>

<bundles_post_ra>
// kernel: tpu_custom_call.1
= control target key start
LH: loop header
LB: loop body
LE: loop exit
PB: predicated region body
PF: predicated region fallthrough
CT: control target
= control target key end

     0   :  { %7 = vsyncpa [#allocation4], 0  ;;  %s367_s0 = inlined_call_operand.hbm [shape: f32[16,32], index: 0, kind: input, shape index: {}]   ;;  %s368_s1 = inlined_call_operand.hbm [shape: f32[32,32], index: 1, kind: input, shape index: {}]   ;;  %s369_s2 = inlined_call_operand.hbm [shape: f32[16,32], index: 2, kind: output, shape index: {}]  }
   0x1   :  { %8 = vsyncpa [#allocation7], 0 }
   0x2   :  { %9 = vsyncpa [#allocation5], 0  ;;  %s291_s9 = smov [#allocation3]   ;;  %s219_s13 = scalar_lea.hbm %s367_s0, 256 }
   0x3   :  { %s15_s10 = sshll.u32 %s291_s9, 4  ;;  %p220_p0 = scmp.ne.s32.totalorder %s367_s0, %s219_s13  ;;  %s16_s10 = int_to_ptr.vmem [resolvable:$true] %s15_s10 }
   0x4   :  { %p223_p1 = scmp.lt.u32.totalorder %s219_s13, %s367_s0 }
   0x6   :  { %p225_p2 = pnand %p223_p1, %p220_p0 }
   0x8   :  { %228 = shalt.err (!%p225_p2)
}
   0x9   :  { %s229_s18 = scalar_lea.vmem %s16_s10, 256  ;;  %p234_p4 = scmp.lt.s32.totalorder %s16_s10, %s16_s10 }
   0xa   :  { %p230_p3 = scmp.ne.s32.totalorder %s16_s10, %s229_s18  ;;  %p235_p5 = scmp.lt.s32.totalorder %s229_s18, %s229_s18 }
   0xc   :  { %p236_p6 = por %p235_p5, %p234_p4 }
   0xe   :  { %p237_p7 = pnand %p236_p6, %p230_p3 }
  0x10   :  { %240 = shalt.err (!%p237_p7)
}
  0x11   :  { %s292_s19 = smov 128   ;;  %s293_s20 = smov 8  }
  0x12   :  { %21 = dma.hbm_to_vmem [thread:$0]  %s367_s0, 256, %s16_s10, [#allocation4], %s292_s19, %s292_s19, %s293_s20  }
  0x13   :  { %s294_s23 = smov [#allocation6]   ;;  %s241_s27 = scalar_lea.hbm %s368_s1, 512 }
  0x14   :  { %s27_s24 = sshll.u32 %s294_s23, 4  ;;  %p242_p8 = scmp.ne.s32.totalorder %s368_s1, %s241_s27  ;;  %s28_s24 = int_to_ptr.vmem [resolvable:$true] %s27_s24 }
  0x15   :  { %p245_p9 = scmp.lt.u32.totalorder %s241_s27, %s368_s1 }
  0x17   :  { %p247_p10 = pnand %p245_p9, %p242_p8 }
  0x19   :  { %250 = shalt.err (!%p247_p10)
}
  0x1a   :  { %s251_s4 = scalar_lea.vmem %s28_s24, 512  ;;  %p256_p12 = scmp.lt.s32.totalorder %s28_s24, %s28_s24 }
  0x1b   :  { %p252_p11 = scmp.ne.s32.totalorder %s28_s24, %s251_s4  ;;  %p257_p13 = scmp.lt.s32.totalorder %s251_s4, %s251_s4 }
  0x1d   :  { %p258_p0 = por %p257_p13, %p256_p12 }
  0x1f   :  { %p259_p1 = pnand %p258_p0, %p252_p11 }
  0x21   :  { %262 = shalt.err (!%p259_p1)
}
  0x22   :  { %33 = dma.hbm_to_vmem [thread:$0]  %s368_s1, 512, %s28_s24, [#allocation7], %s292_s19, %s292_s19, %s293_s20  }
  0x23   :  { %285 = dma.done.wait [#allocation4], 256  }
  0x24   :  { %286 = vsyncadd [#allocation4], 4294967040 }
  0x25   :  { %287 = dma.done.wait [#allocation7], 512  }
  0x26   :  { %288 = vsyncadd [#allocation7], 4294966784  ;;  %vm44_vm0 = vcmask 261120   ;;  %v295_v0 = vmov 0.0   ;;  %v51_v1 = vld [vmem:[#allocation6] sm:$0xff]  ;;  %v52_v2 = vld [vmem:[#allocation6 + $0x8] sm:$0xff] }
  0x27   :  { %46 = vst.msk [vmem:[#allocation2 + $0x8] sm:$0xff] %vm44_vm0, %v295_v0  ;;  %45 = vst.msk [vmem:[#allocation2] sm:$0xff] %vm44_vm0, %v295_v0  ;;  %v53_v3 = vld [vmem:[#allocation6 + $0x10] sm:$0xff]  ;;  %v201_v4 = vpack.c.bf16 %v52_v2, %v51_v1  ;;  %v54_v5 = vld [vmem:[#allocation6 + $0x18] sm:$0xff]  ;;  %s296_s1 = smov [#allocation8]  }
  0x28   :  { %vm202_vm1 = vmpackc.low %vm44_vm0, %vm44_vm0  ;;  %v49_v6 = vld [vmem:[#allocation3] sm:$0xff]  ;;  %v207_v7 = vpack.c.bf16 %v54_v5, %v53_v3  ;;  %v50_v8 = vld [vmem:[#allocation3 + $0x8] sm:$0xff]  ;;  %s165_s6 = sshll.u32 %s296_s1, 4  ;;  %s166_s6 = int_to_ptr.vmem [resolvable:$true] %s165_s6 }
  0x29   :  { %198 = vmatprep.mubr.msk.f32.mxu0 %vm44_vm0, %v49_v6  ;;  %203 = vmatprep.subr.msk.bf16.mxu0 %vm202_vm1, %v201_v4  ;;  %s263_s7 = scalar_lea.vmem %s166_s6, 256  ;;  %p268_p3 = scmp.lt.s32.totalorder %s166_s6, %s166_s6 }
  0x2a   :  { %206 = vmatpush3.bf16.xpose.msk.msra.mxu0 %vm202_vm1, %v201_v4  ;;  %p264_p2 = scmp.ne.s32.totalorder %s166_s6, %s263_s7  ;;  %p269_p4 = scmp.lt.s32.totalorder %s263_s7, %s263_s7 }
  0x2b   :  { %209 = vmatprep.subr.msk.bf16.mxu0 %vm202_vm1, %v207_v7 }
  0x2c   :  { %p270_p5 = por %p269_p4, %p268_p3 }
  0x2e   :  { %v48_v9 = vld [vmem:[#allocation2 + $0x8] sm:$0xff]  ;;  %v47_v10 = vld [vmem:[#allocation2] sm:$0xff]  ;;  %p271_p6 = pnand %p270_p5, %p264_p2 }
  0x32   :  { %212 = vmatpush3.bf16.xpose.msk.msra.mxu0 %vm202_vm1, %v207_v7 }
  0x39   :  { %199 = vmatmul.mubr.msk.f32.vlgmr.msra.gmra.mrb[0].mxu0 %vm44_vm0, %v50_v8 }
 0x10c   :  { %v200_v11 = vpop.f32.mrb[0].mxu0 }
 0x10d   :  { %v150_v12 = vadd.f32 %v200_v11, %v48_v9  ;;  %v140_v13 = vpop.f32.mrb[1].mxu0 }
 0x10e   :  { %v149_v14 = vadd.f32 %v140_v13, %v47_v10 }
 0x10f   :  { %152 = vst.msk [vmem:[#allocation2 + $0x8] sm:$0xff] %vm44_vm0, %v150_v12 }
 0x110   :  { %151 = vst.msk [vmem:[#allocation2] sm:$0xff] %vm44_vm0, %v149_v14 }
 0x116   :  { %v157_v15 = vld [vmem:[#allocation2 + $0x8] sm:$0xff] }
 0x117   :  { %v156_v16 = vld [vmem:[#allocation2] sm:$0xff]  ;;  %159 = vst.msk [vmem:[#allocation8 + $0x8] sm:$0xff] %vm44_vm0, %v157_v15 }
 0x118   :  { %158 = vst.msk [vmem:[#allocation8] sm:$0xff] %vm44_vm0, %v156_v16 }
 0x119   :  { %274 = shalt.err (!%p271_p6)
}
 0x11a   :  { %s275_s10 = scalar_lea.hbm %s369_s2, 256 }
 0x11b   :  { %p276_p7 = scmp.ne.s32.totalorder %s369_s2, %s275_s10  ;;  %p279_p8 = scmp.lt.u32.totalorder %s275_s10, %s369_s2 }
 0x11d   :  { %p281_p9 = pnand %p279_p8, %p276_p7 }
 0x11f   :  { %284 = shalt.err (!%p281_p9)
}
 0x120   :  { %171 = dma.vmem_to_hbm [thread:$0]  %s166_s6, 256, %s369_s2, [#allocation5], %s292_s19, %s292_s19, %s293_s20  }
 0x121   :  { %289 = dma.done.wait [#allocation5], 256  }
 0x122   :  { %290 = vsyncadd [#allocation5], 4294967040 }
 0x123   :  { %175 = vsyncpa [#allocation4], 1 }
 0x124   :  { %176 = vsyncpa [#allocation7], 1 }
 0x125   :  { %177 = vsyncpa [#allocation5], 1 }

</bundles_post_ra>
